<compile_context>
chip_gen: v7x
topology: tpu7x:2x2x1
jax: 0.10.0
libtpu: 0.0.40
codegen_flags: <defaults>
</compile_context>

<pallas_src>
import functools

import jax
import jax.numpy as jnp
from jax.experimental import pallas as pl
from jax.experimental.pallas import tpu as pltpu

BN_EPS = 1e-5


# ----------------------------------------------------------------------------
# Small helpers
# ----------------------------------------------------------------------------
def _round_up(x, m):
    return -(-x // m) * m


def _vmem_capacity_bytes():
    """Physical VMEM of the local generation; conservative fallback (v7x = 64 MiB)."""
    try:
        info = pltpu.get_tpu_info()
        cap = int(getattr(info, "vmem_capacity_bytes", 0) or 0)
        if cap > 0:
            return cap
    except Exception:
        pass
    return 64 * 1024 * 1024


# ----------------------------------------------------------------------------
# Kernels
# ----------------------------------------------------------------------------
def _fused_kernel(*refs, n_in, apply_relu, inv_m):
    """Single pass (VMEM-resident): conv(s) + training-mode BN in one kernel.

    refs = x_0..x_{n-1}, w_0..w_{n-1}, gamma(C_out,1), beta(C_out,1), out(C_out,M).
    BN channels never mix across the per-conv halves, so stats are per half.
    """
    x_refs = refs[:n_in]
    w_refs = refs[n_in:2 * n_in]
    g_ref, b_ref = refs[2 * n_in], refs[2 * n_in + 1]
    o_ref = refs[2 * n_in + 2]

    off = 0
    for x_ref, w_ref in zip(x_refs, w_refs):
        x = x_ref[...]
        if apply_relu:
            x = jnp.maximum(x, 0.0)
        y = jnp.dot(w_ref[...], x, preferred_element_type=jnp.float32)   # (c_i, M)
        c = y.shape[0]
        mean = jnp.sum(y, axis=1, keepdims=True) * inv_m                 # padded cols are 0
        var = jnp.maximum(jnp.sum(y * y, axis=1, keepdims=True) * inv_m - mean * mean, 0.0)
        scale = g_ref[off:off + c, :] * jax.lax.rsqrt(var + BN_EPS)      # EUP rsqrt
        bias = b_ref[off:off + c, :] - mean * scale
        o_ref[off:off + c, :] = (y * scale + bias).astype(o_ref.dtype)
        off += c


def _stats_kernel(*refs, n_in, apply_relu):
    """Pass 1 (tiled): accumulate per-channel [sum(y), sum(y*y)] into a resident
    (C_out, 2) output across an 'arbitrary' grid axis."""
    x_refs = refs[:n_in]
    w_refs = refs[n_in:2 * n_in]
    stats_ref = refs[2 * n_in]

    @pl.when(pl.program_id(0) == 0)
    def _():
        stats_ref[...] = jnp.zeros_like(stats_ref)

    parts = []
    for x_ref, w_ref in zip(x_refs, w_refs):
        x = x_ref[...]
        if apply_relu:
            x = jnp.maximum(x, 0.0)
        y = jnp.dot(w_ref[...], x, preferred_element_type=jnp.float32)
        s = jnp.sum(y, axis=1, keepdims=True)
        sq = jnp.sum(y * y, axis=1, keepdims=True)
        parts.append(jnp.concatenate([s, sq], axis=1))                   # (c_i, 2)
    stats_ref[...] += parts[0] if len(parts) == 1 else jnp.concatenate(parts, axis=0)


def _apply_kernel(*refs, n_in, apply_relu):
    """Pass 2 (tiled): recompute the (trivially cheap) matmul and apply the
    BN affine folded into per-channel scale/bias."""
    x_refs = refs[:n_in]
    w_refs = refs[n_in:2 * n_in]
    scale_ref, bias_ref = refs[2 * n_in], refs[2 * n_in + 1]
    o_ref = refs[2 * n_in + 2]

    off = 0
    for x_ref, w_ref in zip(x_refs, w_refs):
        x = x_ref[...]
        if apply_relu:
            x = jnp.maximum(x, 0.0)
        y = jnp.dot(w_ref[...], x, preferred_element_type=jnp.float32)
        c = y.shape[0]
        o_ref[off:off + c, :] = (y * scale_ref[off:off + c, :]
                                 + bias_ref[off:off + c, :]).astype(o_ref.dtype)
        off += c


# ----------------------------------------------------------------------------
# Wrapper helpers
# ----------------------------------------------------------------------------
def _to_cm(x_nchw):
    n, c, h, w = x_nchw.shape
    return jnp.transpose(x_nchw, (1, 0, 2, 3)).reshape(c, n * h * w)


def _from_cm(y_cm, n, h, w):
    c = y_cm.shape[0]
    return jnp.transpose(y_cm.reshape(c, n, h, w), (1, 0, 2, 3))


def _conv_bn_cm(xs_list, w_list, gamma, beta, apply_relu, force_two_pass=False):
    """1x1-conv(s) (as matmuls over separate channel groups) + training-mode BN.

    xs_list[i]: (c_in_i, M) f32; w_list[i]: (c_out_i, c_in_i).
    Returns (sum_i c_out_i, M) f32 in channel order [group0, group1, ...].
    """
    n_in = len(xs_list)
    m = xs_list[0].shape[1]
    c_ins = [int(xs.shape[0]) for xs in xs_list]
    c_outs = [int(w.shape[0]) for w in w_list]
    c_out = sum(c_outs)
    sum_cin = sum(c_ins)
    mm_flops_per_lane = 2 * sum(co * ci for co, ci in zip(c_outs, c_ins))

    cap = _vmem_capacity_bytes()
    vmem_limit = int(cap * 0.8)     # per-generation limit (51 MiB on v7x, ~102 MiB v5e/v6e)
    budget = int(cap * 0.55)        # what we let the tiling / residency math consume

    m128 = _round_up(m, 128)
    gamma2 = gamma.reshape(-1, 1).astype(jnp.float32)
    beta2 = beta.reshape(-1, 1).astype(jnp.float32)

    def _pad_m(arrs, m_pad):
        if m_pad == m:
            return list(arrs)
        return [jnp.pad(a, ((0, 0), (0, m_pad - m))) for a in arrs]

    # --- single-pass, fully VMEM-resident variant -----------------------------
    # inputs + intermediate y + output, all f32, with a little slack.
    single_bytes = 4 * m128 * (sum_cin + 2 * c_out) + (1 << 20)
    if single_bytes <= budget and not force_two_pass:
        m_pad = m128
        xs_p = _pad_m(xs_list, m_pad)
        y = pl.pallas_call(
            functools.partial(_fused_kernel, n_in=n_in, apply_relu=apply_relu,
                              inv_m=1.0 / m),
            out_shape=jax.ShapeDtypeStruct((c_out, m_pad), jnp.float32),
            compiler_params=pltpu.CompilerParams(vmem_limit_bytes=vmem_limit),
            cost_estimate=pl.CostEstimate(
                flops=(mm_flops_per_lane + 6 * c_out) * m_pad,
                transcendentals=c_out,
                bytes_accessed=4 * m_pad * (sum_cin + c_out)),
        )(*xs_p, *w_list, gamma2, beta2)
        return y[:, :m] if m_pad != m else y

    # --- two-pass tiled variant ------------------------------------------------
    # Per-lane VMEM: double-buffered x tiles + double-buffered out tile + y intermediate.
    per_lane_bytes = 4 * (2 * sum_cin + 3 * c_out)
    tm = max(128, (budget // per_lane_bytes) // 128 * 128)
    half = _round_up(-(-m128 // 2), 128)          # keep >=2 tiles so v7x megacore engages
    tm = min(tm, max(128, half), m128)
    m_pad = _round_up(m, tm)
    n_tiles = m_pad // tm
    xs_p = _pad_m(xs_list, m_pad)

    x_specs = [pl.BlockSpec((ci, tm), lambda i: (0, i)) for ci in c_ins]
    w_specs = [pl.BlockSpec((co, ci), lambda i: (0, 0)) for co, ci in zip(c_outs, c_ins)]

    # Pass 1: global per-channel [sum, sumsq] accumulated in a resident output.
    stats = pl.pallas_call(
        functools.partial(_stats_kernel, n_in=n_in, apply_relu=apply_relu),
        out_shape=jax.ShapeDtypeStruct((c_out, 2), jnp.float32),
        grid=(n_tiles,),
        in_specs=x_specs + w_specs,
        out_specs=pl.BlockSpec((c_out, 2), lambda i: (0, 0)),
        compiler_params=pltpu.CompilerParams(
            dimension_semantics=("arbitrary",), vmem_limit_bytes=vmem_limit),
        cost_estimate=pl.CostEstimate(
            flops=(mm_flops_per_lane + 3 * c_out) * m_pad,
            transcendentals=0,
            bytes_accessed=4 * (m_pad * sum_cin + c_out * 2)),
    )(*xs_p, *w_list)

    # Finalize BN in the wrapper (tiny, per-channel), fold into scale/bias.
    mean = stats[:, 0] / m
    var = jnp.maximum(stats[:, 1] / m - mean * mean, 0.0)     # biased var (training BN)
    scale = gamma * jax.lax.rsqrt(var + BN_EPS)
    bias = beta - mean * scale

    # Pass 2: recompute matmul, apply folded BN, lane-dense output tiles.
    y = pl.pallas_call(
        functools.partial(_apply_kernel, n_in=n_in, apply_relu=apply_relu),
        out_shape=jax.ShapeDtypeStruct((c_out, m_pad), jnp.float32),
        grid=(n_tiles,),
        in_specs=x_specs + w_specs + [pl.BlockSpec((c_out, 1), lambda i: (0, 0))] * 2,
        out_specs=pl.BlockSpec((c_out, tm), lambda i: (0, i)),
        compiler_params=pltpu.CompilerParams(
            dimension_semantics=("parallel",), vmem_limit_bytes=vmem_limit),
        cost_estimate=pl.CostEstimate(
            flops=(mm_flops_per_lane + 2 * c_out) * m_pad,
            transcendentals=0,
            bytes_accessed=4 * m_pad * (sum_cin + c_out)),
    )(*xs_p, *w_list, scale.reshape(-1, 1), bias.reshape(-1, 1))

    return y[:, :m] if m_pad != m else y


@functools.partial(jax.jit, static_argnames=("stride", "force_two_pass"))
def factorized_reduce(x, w1, w2, gamma, beta, stride=2, force_two_pass=False):
    """x: (N, C_in, H, W) f32.  stride=2: w1/w2 = (C_out_i, C_in); stride=1: w1=(C_out, C_in)."""
    n, c_in, h, w = x.shape
    if stride == 2:
        h_out, w_out = (h + 1) // 2, (w + 1) // 2
        # Two separate channels-major inputs (no concat / block-diagonal weight):
        #   path 1: even positions; path 2: shifted (odd) positions, zero at edge.
        x1 = x[:, :, ::2, ::2]
        xp = jnp.pad(x, ((0, 0), (0, 0), (0, 1), (0, 1)))
        x2 = xp[:, :, 1::2, 1::2]
        xs1, xs2 = _to_cm(x1), _to_cm(x2)                              # (C_in, M) each
        y = _conv_bn_cm([xs1, xs2], [w1, w2], gamma, beta,
                        apply_relu=True, force_two_pass=force_two_pass)
        return _from_cm(y, n, h_out, w_out)
    elif stride == 1:
        xs = _to_cm(x)                                                 # (C_in, M)
        y = _conv_bn_cm([xs], [w1], gamma, beta,
                        apply_relu=False, force_two_pass=force_two_pass)
        return _from_cm(y, n, h, w)
    else:
        raise ValueError(f"Invalid stride : {stride}")


# ----------------------------------------------------------------------------
# Plain-JAX references (mirror PyTorch forward, training-mode BN)
# ----------------------------------------------------------------------------
def _reference_s2(x, w1, w2, gamma, beta):
    dn = ("NCHW", "OIHW", "NCHW")
    xr = jnp.maximum(x, 0.0)
    y1 = jax.lax.conv_general_dilated(xr, w1[:, :, None, None], (2, 2), "VALID",
                                      dimension_numbers=dn)
    xshift = jnp.pad(xr, ((0, 0), (0, 0), (0, 1), (0, 1)))[:, :, 1:, 1:]
    y2 = jax.lax.conv_general_dilated(xshift, w2[:, :, None, None], (2, 2), "VALID",
                                      dimension_numbers=dn)
    y = jnp.concatenate([y1, y2], axis=1)
    mean = jnp.mean(y, axis=(0, 2, 3), keepdims=True)
    var = jnp.mean((y - mean) ** 2, axis=(0, 2, 3), keepdims=True)
    yhat = (y - mean) / jnp.sqrt(var + BN_EPS)
    return gamma.reshape(1, -1, 1, 1) * yhat + beta.reshape(1, -1, 1, 1)


def _reference_s1(x, w, gamma, beta):
    dn = ("NCHW", "OIHW", "NCHW")
    y = jax.lax.conv_general_dilated(x, w[:, :, None, None], (1, 1), "VALID",
                                     dimension_numbers=dn)
    mean = jnp.mean(y, axis=(0, 2, 3), keepdims=True)
    var = jnp.mean((y - mean) ** 2, axis=(0, 2, 3), keepdims=True)
    yhat = (y - mean) / jnp.sqrt(var + BN_EPS)
    return gamma.reshape(1, -1, 1, 1) * yhat + beta.reshape(1, -1, 1, 1)


if __name__ == "__main__":
    # Module config: C_in=4, C_out=8, stride=2, affine=True, track_running_stats=True
    N, C_IN, C_OUT, H, W = 2, 4, 8, 16, 16
    C1, C2 = C_OUT // 2, C_OUT - C_OUT // 2

    key = jax.random.PRNGKey(0)
    kx, kw1, kw2, kg, kb, kw3, kx2 = jax.random.split(key, 7)

    x = jax.random.normal(kx, (N, C_IN, H, W), dtype=jnp.float32)
    w1 = 0.2 * jax.random.normal(kw1, (C1, C_IN), dtype=jnp.float32)
    w2 = 0.2 * jax.random.normal(kw2, (C2, C_IN), dtype=jnp.float32)
    gamma = 1.0 + 0.1 * jax.random.normal(kg, (C_OUT,), dtype=jnp.float32)
    beta = 0.1 * jax.random.normal(kb, (C_OUT,), dtype=jnp.float32)

    # --- stride=2 path (the module's configured mode), single-pass fused kernel ---
    out2 = jax.block_until_ready(factorized_reduce(x, w1, w2, gamma, beta, stride=2))
    ref2 = _reference_s2(x, w1, w2, gamma, beta)
    assert out2.shape == (N, C_OUT, H // 2, W // 2), out2.shape
    assert jnp.allclose(out2, ref2, rtol=1e-4, atol=1e-4), float(jnp.max(jnp.abs(out2 - ref2)))

    # --- stride=1 path, single-pass ---
    w_s1 = 0.2 * jax.random.normal(kw3, (C_OUT, C_IN), dtype=jnp.float32)
    out1 = jax.block_until_ready(factorized_reduce(x, w_s1, None, gamma, beta, stride=1))
    ref1 = _reference_s1(x, w_s1, gamma, beta)
    assert out1.shape == (N, C_OUT, H, W), out1.shape
    assert jnp.allclose(out1, ref1, rtol=1e-4, atol=1e-4), float(jnp.max(jnp.abs(out1 - ref1)))

    # --- stride=2, odd spatial + M padding, auto path ---
    Nb, Hb = 5, 37
    xb = jax.random.normal(kx2, (Nb, C_IN, Hb, Hb), dtype=jnp.float32)
    outb = jax.block_until_ready(factorized_reduce(xb, w1, w2, gamma, beta, stride=2))
    refb = _reference_s2(xb, w1, w2, gamma, beta)
    assert outb.shape == (Nb, C_OUT, (Hb + 1) // 2, (Hb + 1) // 2), outb.shape
    assert jnp.allclose(outb, refb, rtol=1e-4, atol=1e-4), float(jnp.max(jnp.abs(outb - refb)))

    # --- same shapes but forcing the two-pass tiled path (multi-tile stats accumulation) ---
    outb2 = jax.block_until_ready(
        factorized_reduce(xb, w1, w2, gamma, beta, stride=2, force_two_pass=True))
    assert jnp.allclose(outb2, refb, rtol=1e-4, atol=1e-4), float(jnp.max(jnp.abs(outb2 - refb)))

    out1b = jax.block_until_ready(
        factorized_reduce(x, w_s1, None, gamma, beta, stride=1, force_two_pass=True))
    assert jnp.allclose(out1b, ref1, rtol=1e-4, atol=1e-4), float(jnp.max(jnp.abs(out1b - ref1)))

    print("KERNEL_OK")
</pallas_src>

<mosaic_0001>
module attributes {stable_mosaic.version = 11 : i64} {
  func.func @_fused_kernel(%arg0: memref<4x128xf32, #tpu.memory_space<vmem>>, %arg1: memref<4x128xf32, #tpu.memory_space<vmem>>, %arg2: memref<4x4xf32, #tpu.memory_space<vmem>>, %arg3: memref<4x4xf32, #tpu.memory_space<vmem>>, %arg4: memref<8x1xf32, #tpu.memory_space<vmem>>, %arg5: memref<8x1xf32, #tpu.memory_space<vmem>>, %arg6: memref<8x128xf32, #tpu.memory_space<vmem>>) attributes {dimension_semantics = [], scalar_prefetch = 0 : i64, scratch_operands = 0 : i64, tpu.core_type = #tpu.core_type<tc>} {
    %c0 = arith.constant 0 : index
    %c0_0 = arith.constant 0 : index
    %0 = vector.load %arg0[%c0, %c0_0] : memref<4x128xf32, #tpu.memory_space<vmem>>, vector<4x128xf32>
    %cst = arith.constant 0.000000e+00 : f32
    %1 = vector.broadcast %cst : f32 to vector<4x128xf32>
    %2 = arith.maximumf %0, %1 : vector<4x128xf32>
    %c0_1 = arith.constant 0 : index
    %c0_2 = arith.constant 0 : index
    %3 = vector.load %arg2[%c0_1, %c0_2] : memref<4x4xf32, #tpu.memory_space<vmem>>, vector<4x4xf32>
    %cst_3 = arith.constant dense<0.000000e+00> : vector<4x128xf32>
    %4 = tpu.matmul %3, %2, %cst_3 {dimension_numbers = #tpu.dot_dimension_numbers<[1], [0], [0], [1], [0, 0, 1, 1], [], []>} : vector<4x4xf32>, vector<4x128xf32>, vector<4x128xf32> -> vector<4x128xf32>
    %cst_4 = arith.constant dense<0.000000e+00> : vector<4xf32>
    %5 = vector.multi_reduction <add>, %4, %cst_4 [1] : vector<4x128xf32> to vector<4xf32>
    %6 = vector.shape_cast %5 : vector<4xf32> to vector<4x1xf32>
    %cst_5 = arith.constant 7.812500e-03 : f32
    %7 = vector.broadcast %cst_5 : f32 to vector<4x1xf32>
    %8 = arith.mulf %6, %7 : vector<4x1xf32>
    %9 = arith.mulf %4, %4 : vector<4x128xf32>
    %cst_6 = arith.constant dense<0.000000e+00> : vector<4xf32>
    %10 = vector.multi_reduction <add>, %9, %cst_6 [1] : vector<4x128xf32> to vector<4xf32>
    %11 = vector.shape_cast %10 : vector<4xf32> to vector<4x1xf32>
    %cst_7 = arith.constant 7.812500e-03 : f32
    %12 = vector.broadcast %cst_7 : f32 to vector<4x1xf32>
    %13 = arith.mulf %11, %12 : vector<4x1xf32>
    %14 = arith.mulf %8, %8 : vector<4x1xf32>
    %15 = arith.subf %13, %14 : vector<4x1xf32>
    %cst_8 = arith.constant 0.000000e+00 : f32
    %16 = vector.broadcast %cst_8 : f32 to vector<4x1xf32>
    %17 = arith.maximumf %15, %16 : vector<4x1xf32>
    %c0_9 = arith.constant 0 : index
    %c0_10 = arith.constant 0 : index
    %18 = vector.load %arg4[%c0_9, %c0_10] : memref<8x1xf32, #tpu.memory_space<vmem>>, vector<4x1xf32>
    %cst_11 = arith.constant 9.99999974E-6 : f32
    %19 = vector.broadcast %cst_11 : f32 to vector<4x1xf32>
    %20 = arith.addf %17, %19 : vector<4x1xf32>
    %21 = math.rsqrt %20 : vector<4x1xf32>
    %22 = arith.mulf %18, %21 : vector<4x1xf32>
    %c0_12 = arith.constant 0 : index
    %c0_13 = arith.constant 0 : index
    %23 = vector.load %arg5[%c0_12, %c0_13] : memref<8x1xf32, #tpu.memory_space<vmem>>, vector<4x1xf32>
    %24 = arith.mulf %8, %22 : vector<4x1xf32>
    %25 = arith.subf %23, %24 : vector<4x1xf32>
    %26 = vector.broadcast %22 : vector<4x1xf32> to vector<4x128xf32>
    %27 = arith.mulf %4, %26 : vector<4x128xf32>
    %28 = vector.broadcast %25 : vector<4x1xf32> to vector<4x128xf32>
    %29 = arith.addf %27, %28 : vector<4x128xf32>
    %c0_14 = arith.constant 0 : index
    %c0_15 = arith.constant 0 : index
    %30 = vector.load %arg6[%c0_14, %c0_15] : memref<8x128xf32, #tpu.memory_space<vmem>>, vector<4x128xf32>
    tpu.vector_store %arg6[%c0_14, %c0_15], %29 {strides = array<i32>} : memref<8x128xf32, #tpu.memory_space<vmem>>, vector<4x128xf32>,
    %c0_16 = arith.constant 0 : index
    %c0_17 = arith.constant 0 : index
    %31 = vector.load %arg1[%c0_16, %c0_17] : memref<4x128xf32, #tpu.memory_space<vmem>>, vector<4x128xf32>
    %cst_18 = arith.constant 0.000000e+00 : f32
    %32 = vector.broadcast %cst_18 : f32 to vector<4x128xf32>
    %33 = arith.maximumf %31, %32 : vector<4x128xf32>
    %c0_19 = arith.constant 0 : index
    %c0_20 = arith.constant 0 : index
    %34 = vector.load %arg3[%c0_19, %c0_20] : memref<4x4xf32, #tpu.memory_space<vmem>>, vector<4x4xf32>
    %cst_21 = arith.constant dense<0.000000e+00> : vector<4x128xf32>
    %35 = tpu.matmul %34, %33, %cst_21 {dimension_numbers = #tpu.dot_dimension_numbers<[1], [0], [0], [1], [0, 0, 1, 1], [], []>} : vector<4x4xf32>, vector<4x128xf32>, vector<4x128xf32> -> vector<4x128xf32>
    %cst_22 = arith.constant dense<0.000000e+00> : vector<4xf32>
    %36 = vector.multi_reduction <add>, %35, %cst_22 [1] : vector<4x128xf32> to vector<4xf32>
    %37 = vector.shape_cast %36 : vector<4xf32> to vector<4x1xf32>
    %cst_23 = arith.constant 7.812500e-03 : f32
    %38 = vector.broadcast %cst_23 : f32 to vector<4x1xf32>
    %39 = arith.mulf %37, %38 : vector<4x1xf32>
    %40 = arith.mulf %35, %35 : vector<4x128xf32>
    %cst_24 = arith.constant dense<0.000000e+00> : vector<4xf32>
    %41 = vector.multi_reduction <add>, %40, %cst_24 [1] : vector<4x128xf32> to vector<4xf32>
    %42 = vector.shape_cast %41 : vector<4xf32> to vector<4x1xf32>
    %cst_25 = arith.constant 7.812500e-03 : f32
    %43 = vector.broadcast %cst_25 : f32 to vector<4x1xf32>
    %44 = arith.mulf %42, %43 : vector<4x1xf32>
    %45 = arith.mulf %39, %39 : vector<4x1xf32>
    %46 = arith.subf %44, %45 : vector<4x1xf32>
    %cst_26 = arith.constant 0.000000e+00 : f32
    %47 = vector.broadcast %cst_26 : f32 to vector<4x1xf32>
    %48 = arith.maximumf %46, %47 : vector<4x1xf32>
    %c4 = arith.constant 4 : index
    %c0_27 = arith.constant 0 : index
    %49 = vector.load %arg4[%c4, %c0_27] : memref<8x1xf32, #tpu.memory_space<vmem>>, vector<4x1xf32>
    %cst_28 = arith.constant 9.99999974E-6 : f32
    %50 = vector.broadcast %cst_28 : f32 to vector<4x1xf32>
    %51 = arith.addf %48, %50 : vector<4x1xf32>
    %52 = math.rsqrt %51 : vector<4x1xf32>
    %53 = arith.mulf %49, %52 : vector<4x1xf32>
    %c4_29 = arith.constant 4 : index
    %c0_30 = arith.constant 0 : index
    %54 = vector.load %arg5[%c4_29, %c0_30] : memref<8x1xf32, #tpu.memory_space<vmem>>, vector<4x1xf32>
    %55 = arith.mulf %39, %53 : vector<4x1xf32>
    %56 = arith.subf %54, %55 : vector<4x1xf32>
    %57 = vector.broadcast %53 : vector<4x1xf32> to vector<4x128xf32>
    %58 = arith.mulf %35, %57 : vector<4x128xf32>
    %59 = vector.broadcast %56 : vector<4x1xf32> to vector<4x128xf32>
    %60 = arith.addf %58, %59 : vector<4x128xf32>
    %c4_31 = arith.constant 4 : index
    %c0_32 = arith.constant 0 : index
    %61 = vector.load %arg6[%c4_31, %c0_32] : memref<8x128xf32, #tpu.memory_space<vmem>>, vector<4x128xf32>
    tpu.vector_store %arg6[%c4_31, %c0_32], %60 {strides = array<i32>} : memref<8x128xf32, #tpu.memory_space<vmem>>, vector<4x128xf32>,
    return
  }
}

</mosaic_0001>

<bundles_post_ra>
// kernel: factorized_reduce.1
= control target key start
LH: loop header
LB: loop body
LE: loop exit
PB: predicated region body
PF: predicated region fallthrough
CT: control target
= control target key end

     0   :  { %v278_v0 = vmov 0.0   ;;  %vm30_vm0 = vcmask 1043456   ;;  %vm279_vm1 = vmmov 0   ;;  %vm26_vm2 = vcmask 31744   ;;  %s352_s0 = inlined_call_operand.vmem [shape: f32[4,128], index: 0, kind: input, shape index: {}]   ;;  %s353_s2 = inlined_call_operand.vmem [shape: f32[4,4], index: 2, kind: input, shape index: {}]   ;;  %s354_s1 = inlined_call_operand.vmem [shape: f32[4,128], index: 1, kind: input, shape index: {}]   ;;  %s355_s3 = inlined_call_operand.vmem [shape: f32[4,4], index: 3, kind: input, shape index: {}]   ;;  %s356_s4 = inlined_call_operand.vmem [shape: f32[8,1], index: 4, kind: input, shape index: {}]   ;;  %s357_s5 = inlined_call_operand.vmem [shape: f32[8,1], index: 5, kind: input, shape index: {}]   ;;  %s358_s6 = inlined_call_operand.vmem [shape: f32[8,128], index: 6, kind: output, shape index: {}]  }
   0x1   :  { %259 = vmatprep.subr.mxu0 %v278_v0  ;;  %v23_v1 = vld [vmem:[%s352_s0] sm:$0xf]  ;;  %261 = vmatprep.mubr.msk.f32.mxu0 %vm279_vm1, %v278_v0  ;;  %v280_v17 = vmov 0   ;;  %v227_v37 = vld [vmem:[%s356_s4 + $0x4] sm:$0xf] }
   0x2   :  { %v136_v2 = vld [vmem:[%s354_s1] sm:$0xf]  ;;  %v24_v3 = vmax.f32 %v23_v1, 0.0  ;;  %264 = vmatprep.subr.mxu1 %v278_v0  ;;  %266 = vmatprep.mubr.msk.f32.mxu1 %vm279_vm1, %v278_v0  ;;  %v231_v44 = vld [vmem:[%s357_s5 + $0x4] sm:$0xf] }
   0x3   :  { %v25_v4 = vld [vmem:[%s353_s2] sm:$0xf]  ;;  %v137_v5 = vmax.f32 %v136_v2, 0.0  ;;  %272 = vset.pattern.permute.xlu0 %v280_v17  ;;  %273 = vset.pattern.permute.xlu1 %v280_v17 }
   0x4   :  { %v138_v6 = vld [vmem:[%s355_s3] sm:$0xf]  ;;  %260 = vmatpush3.msk.msra.mxu0 %vm30_vm0, %v24_v3 }
   0x5   :  { %265 = vmatpush3.msk.msra.mxu1 %vm30_vm0, %v137_v5  ;;  %262 = vmatmul.mubr.msk.f32.vlgmr.msra.gmra.mrb[0].mxu0 %vm26_vm2, %v25_v4  ;;  %v116_v34 = vld [vmem:[%s356_s4] sm:$0xf] }
   0x6   :  { %267 = vmatmul.mubr.msk.f32.vlgmr.msra.gmra.mrb[0].mxu1 %vm26_vm2, %v138_v6  ;;  %v120_v41 = vld [vmem:[%s357_s5] sm:$0xf] }
  0xd8   :  { %v100_v7 = vpop.f32.mrb[0].mxu0 }
  0xd9   :  { %v211_v8 = vpop.f32.mrb[0].mxu1  ;;  %v263_v9 = vpop.f32.mrb[1].mxu0  ;;  %v104_v10 = vsel %vm30_vm0, %v100_v7, 0.0  ;;  %v108_v12 = vmul.f32 %v100_v7, %v100_v7 }
  0xda   :  { %v268_v11 = vpop.f32.mrb[1].mxu1  ;;  %v219_v13 = vmul.f32 %v211_v8, %v211_v8  ;;  %105 = vadd.xlane.f32.xlu0 %v104_v10  ;;  %v215_v15 = vsel %vm30_vm0, %v211_v8, 0.0 }
  0xdb   :  { %v109_v14 = vsel %vm30_vm0, %v108_v12, 0.0 }
  0xdc   :  { %110 = vadd.xlane.f32.xlu1 %v109_v14  ;;  %v220_v16 = vsel %vm30_vm0, %v219_v13, 0.0 }
  0xde   :  { %216 = vadd.xlane.f32.xlu0 %v215_v15 }
  0xe0   :  { %221 = vadd.xlane.f32.xlu1 %v220_v16 }
 0x167   :  { %v106_v18 = vpop.xlane.xlu0 %105 }
 0x168   :  { %v107_v19 = vmul.f32 0.0078125, %v106_v18 }
 0x169   :  { %v111_v20 = vpop.xlane.xlu1 %110 }
 0x16a   :  { %v113_v21 = vmul.f32 %v107_v19, %v107_v19  ;;  %v112_v22 = vmul.f32 0.0078125, %v111_v20 }
 0x16b   :  { %v217_v23 = vpop.xlane.xlu0 %216 }
 0x16c   :  { %v114_v24 = vsub.f32 %v112_v22, %v113_v21  ;;  %v218_v25 = vmul.f32 0.0078125, %v217_v23 }
 0x16d   :  { %v222_v26 = vpop.xlane.xlu1 %221 }
 0x16e   :  { %v115_v27 = vmax.f32 %v114_v24, 0.0  ;;  %v224_v28 = vmul.f32 %v218_v25, %v218_v25  ;;  %v223_v29 = vmul.f32 0.0078125, %v222_v26 }
 0x170   :  { %v117_v30 = vadd.f32 1e-05, %v115_v27  ;;  %v225_v31 = vsub.f32 %v223_v29, %v224_v28 }
 0x172   :  { %274 = vrsqrt.f32 %v117_v30  ;;  %v226_v32 = vmax.f32 %v225_v31, 0.0 }
 0x174   :  { %v228_v33 = vadd.f32 1e-05, %v226_v32 }
 0x176   :  { %276 = vrsqrt.f32 %v228_v33 }
 0x17c   :  { %v275_v35 = vpop.eup %274 }
 0x17d   :  { %v119_v36 = vmul.f32 %v275_v35, %v116_v34 }
 0x17f   :  { %125 = vperm.xlu0 %272, %v119_v36   ;;  %v121_v40 = vmul.f32 %v119_v36, %v107_v19 }
 0x180   :  { %v277_v38 = vpop.eup %276 }
 0x181   :  { %v230_v39 = vmul.f32 %v277_v38, %v227_v37  ;;  %v122_v42 = vsub.f32 %v120_v41, %v121_v40 }
 0x183   :  { %236 = vperm.xlu1 %273, %v230_v39   ;;  %v232_v43 = vmul.f32 %v230_v39, %v218_v25 }
 0x185   :  { %v233_v45 = vsub.f32 %v231_v44, %v232_v43 }
 0x187   :  { %131 = vperm.xlu1 %273, %v122_v42  }
 0x18b   :  { %242 = vperm.xlu1 %273, %v233_v45  }
 0x1fe   :  { %v126_v46 = vpop.permute.xlu0 %125 }
 0x1ff   :  { %v128_v48 = vmul.f32 %v126_v46, %v100_v7 }
 0x202   :  { %v237_v47 = vpop.permute.xlu1 %236 }
 0x203   :  { %v239_v51 = vmul.f32 %v237_v47, %v211_v8 }
 0x206   :  { %v132_v49 = vpop.permute.xlu1 %131 }
 0x207   :  { %v134_v50 = vadd.f32 %v132_v49, %v128_v48 }
 0x209   :  { %135 = vst [vmem:[%s358_s6] sm:$0xf] %v134_v50 }
 0x20a   :  { %v243_v52 = vpop.permute.xlu1 %242 }
 0x20b   :  { %v245_v53 = vadd.f32 %v243_v52, %v239_v51 }
 0x20d   :  { %246 = vst [vmem:[%s358_s6 + $0x4] sm:$0xf] %v245_v53 }

</bundles_post_ra>
